<compile_context>
chip_gen: v5e
topology: v5e:2x2
jax: 0.10.0
libtpu: 0.0.40
codegen_flags: <defaults>
</compile_context>

<pallas_src>
import functools

import numpy as np
import jax
import jax.numpy as jnp
from jax.experimental import pallas as pl
from jax.experimental.pallas import tpu as pltpu


# sym8 scaling (reconstruction low-pass) filter, 16 taps. dec_lo / dec_hi are
# derived with the standard orthogonal QMF relations used by pywt.
SYM8_REC_LO = np.array(
    [
        -0.0033824159510061256, -0.00054213233179114812, 0.031695087811492981,
        0.0076074873249176054, -0.14329423835080971, -0.061273359067658524,
        0.48135965125837221, 0.77718575170052351, 0.3644418948353314,
        -0.051945838107709037, -0.027219029917056003, 0.049137179673607506,
        0.0038087520138906151, -0.014952258337048231, -0.0003029205147213668,
        0.0018899503327594609,
    ],
    dtype=np.float64,
)


def _round_up(v, m):
    return ((v + m - 1) // m) * m


def _round_down(v, m):
    return (v // m) * m


# ----------------------------------------------------------------------------
# Per-generation tuning tables (review: generation-gated tiles / VMEM limits).
# ----------------------------------------------------------------------------
_TILE_CAP = {"v7x": 2048, "v6e": 2048, "v5e": 1024, "other": 1024}
_M_TILE_BUDGET = {"v7x": 12 << 20, "v6e": 16 << 20, "v5e": 8 << 20, "other": 8 << 20}
_VMEM_LIMIT = {"v7x": 48 << 20, "v6e": 64 << 20, "v5e": 48 << 20, "other": 48 << 20}


def _device_generation():
    try:
        kind = jax.devices()[0].device_kind.lower()
    except Exception:
        kind = ""
    if "v7" in kind:
        return "v7x"
    if "v6" in kind:
        return "v6e"
    if "v5 lite" in kind or "v5e" in kind or "v5lite" in kind:
        return "v5e"
    return "other"


def _select_tn(K, T, max_lev, filt_len, m_elt_bytes, gen):
    """Column-tile width: lane-dense, >=2 parallel tiles when possible, VMEM-safe."""
    cap = _TILE_CAP[gen]
    budget = _M_TILE_BUDGET[gen]
    k128 = _round_up(K, 128)
    tn = min(cap, k128)
    if k128 >= 256:  # guarantee >= 2 K tiles so both TCs (v7x megacore) get work
        tn = min(tn, max(128, _round_down(k128 // 2, 128)))
    support = (2 ** max_lev) * 2 * filt_len  # generous band estimate (exact band
    # is measured from the actual matrix afterwards)
    while tn > 128 and min(T, tn + support) * tn * m_elt_bytes > budget:
        tn = max(128, _round_down(tn // 2, 128))
    return tn


# ----------------------------------------------------------------------------
# Host-side (plain numpy) construction of the linear packet-transform matrix.
# Built once per (T, max_lev, filter) and cached as a banded device slab.
# ----------------------------------------------------------------------------
def _graycode_order(level):
    order = ["a", "d"]
    for _ in range(level - 1):
        order = ["a" + p for p in order] + ["d" + p for p in order[::-1]]
    return order


def _dec_filters(rec_lo):
    rec_lo = np.asarray(rec_lo, dtype=np.float64)
    dec_lo = rec_lo[::-1].copy()
    n = np.arange(rec_lo.shape[0])
    dec_hi = ((-1.0) ** (n + 1)) * rec_lo          # pywt QMF convention (even length)
    return dec_lo, dec_hi


def _fwt_pad_amount(length, filt_len):
    # ptwt _get_pad(): total pad 2*F-3, extra right pad for odd lengths.
    padl = padr = (2 * filt_len - 3) // 2
    if length % 2 != 0:
        padr += 1
    return padl, padr


def _reflect_pad_matrix(L, padl, padr):
    # torch F.pad(mode='reflect') as an [L, L+padl+padr] selection matrix.
    Lp = L + padl + padr
    P = np.zeros((L, Lp), dtype=np.float64)
    for m in range(Lp):
        if m < padl:
            src = padl - m
        elif m < padl + L:
            src = m - padl
        else:
            src = L - 2 - (m - padl - L)
        P[src, m] = 1.0
    return P


def _conv_stride2_matrix(Lp, filt):
    # stride-2 correlation with `filt` as an [Lp, Lo] matrix.
    F = filt.shape[0]
    Lo = (Lp - F) // 2 + 1
    C = np.zeros((Lp, Lo), dtype=np.float64)
    for i in range(Lo):
        C[2 * i:2 * i + F, i] = filt
    return C


def build_packet_matrix(T, rec_lo, max_lev):
    """Linear map [T, 2**max_lev * t_pack] (float64), node-major graycode columns."""
    dec_lo, dec_hi = _dec_filters(rec_lo)
    F = dec_lo.shape[0]
    level_mats = []
    L = T
    for _ in range(max_lev):
        padl, padr = _fwt_pad_amount(L, F)
        if L - 1 < max(padl, padr):
            # reflect padding would index out of range; ptwt/torch behaviour for
            # repeated reflection on very short signals is not replicated here.
            raise NotImplementedError(
                f"signal length {L} too short for reflect padding with a "
                f"{F}-tap wavelet at this decomposition level")
        Lp = L + padl + padr
        P = _reflect_pad_matrix(L, padl, padr)
        # ptwt flips dec filters then runs conv1d (correlation) with stride 2.
        w_lo = P @ _conv_stride2_matrix(Lp, dec_lo[::-1])
        w_hi = P @ _conv_stride2_matrix(Lp, dec_hi[::-1])
        level_mats.append((w_lo, w_hi))
        L = w_lo.shape[1]
    cols = []
    for path in _graycode_order(max_lev):
        W = None
        for lev, ch in enumerate(path):
            A = level_mats[lev][0 if ch == "a" else 1]
            W = A if W is None else W @ A
        cols.append(W)
    M = np.concatenate(cols, axis=1)                # [T, K] node-major, float64
    return M, L                                     # L == t_pack


def _pack_banded_slab(M, T, n_nodes, t_pack, tn, m_format):
    """Reorder columns time-major and pack the row-band of each column tile.

    Returns device arrays:
      m_slab  [n_tiles, band_pad, tn]  (bf16 or int8)
      scales  [1, n_tiles*tn]          f32 per-column dequant scale (1.0 for bf16)
      starts  [n_tiles]                i32 128-aligned row offset of each band
    """
    K = n_nodes * t_pack
    # time-major column order: col = time_idx * n_nodes + node(graycode)
    M_tm = np.ascontiguousarray(
        M.reshape(T, n_nodes, t_pack).transpose(0, 2, 1).reshape(T, K))
    K_pad = _round_up(K, tn)
    n_tiles = K_pad // tn
    T_pad = _round_up(T, 128)
    Mp = np.zeros((T_pad, K_pad), dtype=np.float64)
    Mp[:T, :K] = M_tm

    row_lo = np.zeros(n_tiles, dtype=np.int64)
    row_hi = np.zeros(n_tiles, dtype=np.int64)
    for t in range(n_tiles):
        cols = Mp[:, t * tn:(t + 1) * tn]
        nz = np.nonzero(np.any(cols != 0.0, axis=1))[0]
        if nz.size:
            row_lo[t], row_hi[t] = nz[0], nz[-1]
    starts0 = (row_lo // 128) * 128                 # 128-aligned band starts
    band_pad = int(_round_up(int((row_hi - starts0).max()) + 1, 128))
    band_pad = min(band_pad, T_pad)
    starts = np.clip(starts0, 0, T_pad - band_pad).astype(np.int32)

    slab = np.zeros((n_tiles, band_pad, tn), dtype=np.float64)
    for t in range(n_tiles):
        s = int(starts[t])
        slab[t] = Mp[s:s + band_pad, t * tn:(t + 1) * tn]

    if m_format == "int8":
        colmax = np.max(np.abs(slab), axis=1)                     # (n_tiles, tn)
        safe = np.where(colmax > 0.0, colmax, 1.0)
        q = np.clip(np.round(slab / safe[:, None, :] * 127.0), -127, 127)
        m_dev = jnp.asarray(q.astype(np.int8))
        scales = jnp.asarray((colmax / 127.0).reshape(1, K_pad).astype(np.float32))
    else:  # bf16
        m_dev = jnp.asarray(slab.astype(np.float32)).astype(jnp.bfloat16)
        scales = jnp.ones((1, K_pad), dtype=jnp.float32)

    return dict(m_slab=m_dev, scales=scales,
                starts=jnp.asarray(starts, dtype=jnp.int32),
                band_pad=band_pad, K_pad=K_pad, n_tiles=n_tiles)


# ----------------------------------------------------------------------------
# Pallas kernel: one banded MXU dot per column tile, fused epilogue.
# grid = (n_tiles,)  [parallel].
# ----------------------------------------------------------------------------
def _packets_kernel(x_ref, m_ref, s_ref, *out_refs, log_scale, loss_less, power):
    x = x_ref[0]                                   # (B, band_pad) bf16
    m = m_ref[0].astype(jnp.bfloat16)              # (band_pad, tn), bf16 or int8->bf16
    y = jnp.dot(x, m, preferred_element_type=jnp.float32)   # (B, tn) f32
    y = y * s_ref[...]                             # per-column dequant scale (1.0 if bf16)
    if log_scale:
        a = jnp.abs(y)
        a_pow = a * a if power == 2.0 else a ** power
        out_refs[0][...] = jnp.log(a_pow + 1e-12)
        if loss_less:
            # ((y < 0)*-1 + 0.5)*2  ==  -1 where y<0 else +1
            out_refs[1][...] = jnp.where(y < 0.0, -1.0, 1.0).astype(jnp.float32)
    else:
        out_refs[0][...] = y


@functools.partial(
    jax.jit,
    static_argnames=("log_scale", "loss_less", "power", "band_pad", "tn",
                     "k_real", "n_nodes", "t_pack", "vmem_limit"))
def _packets_forward(x, m_slab, scales, starts, *, log_scale, loss_less, power,
                     band_pad, tn, k_real, n_nodes, t_pack, vmem_limit):
    B, T = x.shape
    n_tiles = m_slab.shape[0]
    K_pad = n_tiles * tn
    T_pad = _round_up(T, 128)
    if T_pad != T:
        x = jnp.pad(x, ((0, 0), (0, T_pad - T)))
    x = x.astype(jnp.bfloat16)

    # Extract the per-tile row bands of x (tiny vs. the M stream); static-shaped
    # gather, one copy of each band, so the kernel never re-DMAs x per step.
    idx = starts[:, None] + jnp.arange(band_pad, dtype=jnp.int32)[None, :]
    x_bands = jnp.transpose(x[:, idx], (1, 0, 2))          # (n_tiles, B, band_pad)

    n_out = 2 if (log_scale and loss_less) else 1
    kernel = functools.partial(
        _packets_kernel, log_scale=log_scale, loss_less=loss_less, power=power)

    out_shape = tuple(jax.ShapeDtypeStruct((B, K_pad), jnp.float32)
                      for _ in range(n_out))
    out_specs = tuple(pl.BlockSpec((B, tn), lambda n: (0, n)) for _ in range(n_out))

    cost = pl.CostEstimate(
        flops=2 * B * band_pad * K_pad,
        transcendentals=(B * K_pad) if log_scale else 0,
        bytes_accessed=int(m_slab.size * m_slab.dtype.itemsize
                           + x_bands.size * 2 + scales.size * 4
                           + n_out * B * K_pad * 4))

    outs = pl.pallas_call(
        kernel,
        out_shape=out_shape,
        grid=(n_tiles,),
        in_specs=[
            pl.BlockSpec((1, B, band_pad), lambda n: (n, 0, 0)),   # x band
            pl.BlockSpec((1, band_pad, tn), lambda n: (n, 0, 0)),  # M slab tile
            pl.BlockSpec((1, tn), lambda n: (0, n)),               # per-col scales
        ],
        out_specs=out_specs,
        compiler_params=pltpu.CompilerParams(
            dimension_semantics=("parallel",),
            vmem_limit_bytes=vmem_limit),
        cost_estimate=cost,
    )(x_bands, m_slab, scales)

    def unscramble(o):
        # time-major columns -> [B, 2**max_lev (graycode), t_pack]
        o = o[:, :k_real].reshape(B, t_pack, n_nodes)
        return jnp.transpose(o, (0, 2, 1))

    if n_out == 2:
        return jnp.stack([unscramble(outs[0]), unscramble(outs[1])], axis=1)
    return unscramble(outs[0])[:, None]


class Packets:
    """JAX/Pallas equivalent of the PyTorch `Packets` module."""

    def __init__(self, wavelet_rec_lo=SYM8_REC_LO, max_lev=8, log_scale=False,
                 loss_less=False, power=2.0, block_norm=False,
                 compute_welford=False, block_norm_dict=None, m_format="bf16"):
        if block_norm or compute_welford:
            # TODO(synk): block_norm (per-node max-abs normalization) and
            # compute_welford (stateful host-side Welford dict) have no clean
            # Pallas equivalent here; refuse rather than silently diverge.
            raise NotImplementedError(
                "block_norm / compute_welford are not supported by the Pallas port")
        if m_format not in ("bf16", "int8"):
            # TODO(synk): add fp8(e4m3) M storage for v7x (no integer MXU path there).
            raise ValueError("m_format must be 'bf16' or 'int8'")
        self.rec_lo = np.asarray(wavelet_rec_lo, dtype=np.float64)
        self.max_lev = int(max_lev)
        self.log_scale = bool(log_scale)
        self.loss_less = bool(loss_less)
        self.power = float(power)
        self.m_format = m_format
        self.block_norm_dict = block_norm_dict
        self._cache = {}                             # T -> prepared slab/config

    def _prepare(self, T):
        key = int(T)
        if key not in self._cache:
            gen = _device_generation()
            M_f64, t_pack = build_packet_matrix(T, self.rec_lo, self.max_lev)
            n_nodes = 2 ** self.max_lev
            K = n_nodes * t_pack
            m_elt = 1 if self.m_format == "int8" else 2
            tn = _select_tn(K, T, self.max_lev, self.rec_lo.shape[0], m_elt, gen)
            slab = _pack_banded_slab(M_f64, T, n_nodes, t_pack, tn, self.m_format)
            slab.update(tn=tn, t_pack=t_pack, K=K, vmem_limit=_VMEM_LIMIT[gen])
            self._cache[key] = slab
        return self._cache[key]

    def __call__(self, x):
        B, T = x.shape
        c = self._prepare(T)
        packets = _packets_forward(
            x, c["m_slab"], c["scales"], c["starts"],
            log_scale=self.log_scale, loss_less=self.loss_less, power=self.power,
            band_pad=c["band_pad"], tn=c["tn"], k_real=c["K"],
            n_nodes=2 ** self.max_lev, t_pack=c["t_pack"],
            vmem_limit=c["vmem_limit"])
        return packets, (self.block_norm_dict if self.block_norm_dict is not None else {})


# ----------------------------------------------------------------------------
# Pure-numpy reference (level-by-level reflect pad + stride-2 correlation),
# mirroring ptwt's WaveletPacket; used only to sanity-check the kernel.
# ----------------------------------------------------------------------------
def _np_reflect_pad(x, padl, padr):
    left = x[:, 1:padl + 1][:, ::-1]
    right = x[:, -padr - 1:-1][:, ::-1]
    return np.concatenate([left, x, right], axis=1)


def _np_dwt_level(x, dec_lo, dec_hi):
    F = dec_lo.shape[0]
    padl, padr = _fwt_pad_amount(x.shape[-1], F)
    xp = _np_reflect_pad(x, padl, padr)
    Lo = (xp.shape[-1] - F) // 2 + 1
    flo, fhi = dec_lo[::-1], dec_hi[::-1]
    lo = np.zeros((x.shape[0], Lo), dtype=np.float64)
    hi = np.zeros((x.shape[0], Lo), dtype=np.float64)
    for i in range(Lo):
        seg = xp[:, 2 * i:2 * i + F]
        lo[:, i] = seg @ flo
        hi[:, i] = seg @ fhi
    return lo, hi


def _np_packet_reference(x, rec_lo, max_lev):
    dec_lo, dec_hi = _dec_filters(rec_lo)
    nodes = {"": x.astype(np.float64)}
    for _ in range(max_lev):
        nxt = {}
        for path, data in nodes.items():
            lo, hi = _np_dwt_level(data, dec_lo, dec_hi)
            nxt[path + "a"] = lo
            nxt[path + "d"] = hi
        nodes = nxt
    return np.stack([nodes[p] for p in _graycode_order(max_lev)], axis=1)  # [B,N,t_pack]


if __name__ == "__main__":
    key = jax.random.PRNGKey(0)
    B, T, MAX_LEV = 2, 256, 3   # small shapes: 3-level sym8 packet tree
    x = jax.random.normal(key, (B, T), dtype=jnp.float32)

    # --- default module config (log_scale=False, loss_less=False, bf16 M) ---
    mod = Packets(max_lev=MAX_LEV)
    packets, _ = mod(x)
    packets = jax.block_until_ready(packets)

    M_f64, t_pack = build_packet_matrix(T, SYM8_REC_LO, MAX_LEV)
    n_nodes = 2 ** MAX_LEV
    assert packets.shape == (B, 1, n_nodes, t_pack), packets.shape
    assert mod._cache[T]["n_tiles"] >= 2            # >=2 parallel column tiles

    # Check A (exact, f64): the folded matrix equals the level-by-level tree.
    x_f64 = np.asarray(x, dtype=np.float64)
    ref_tree = _np_packet_reference(x_f64, SYM8_REC_LO, MAX_LEV)
    np.testing.assert_allclose(
        (x_f64 @ M_f64).reshape(B, n_nodes, t_pack), ref_tree, rtol=1e-8, atol=1e-8)

    # Check B (tight): kernel matches a bf16-emulated matmul (same roundings).
    x_bf = np.asarray(
        jnp.asarray(np.asarray(x)).astype(jnp.bfloat16).astype(jnp.float32),
        dtype=np.float64)
    m_bf = np.asarray(
        jnp.asarray(M_f64.astype(np.float32)).astype(jnp.bfloat16).astype(jnp.float32),
        dtype=np.float64)
    y_emul = (x_bf @ m_bf).reshape(B, n_nodes, t_pack)
    np.testing.assert_allclose(
        np.asarray(packets[:, 0], dtype=np.float64), y_emul, rtol=1e-2, atol=1e-3)

    # Check C (loose, end-to-end): kernel vs exact tree within bf16 matmul noise.
    np.testing.assert_allclose(
        np.asarray(packets[:, 0], dtype=np.float64), ref_tree, rtol=1e-1, atol=6e-2)

    # --- log-scale + lossless variant (exercises the fused split epilogue) ---
    mod2 = Packets(max_lev=MAX_LEV, log_scale=True, loss_less=True, power=2.0)
    packets2, _ = mod2(x)
    packets2 = jax.block_until_ready(packets2)
    assert packets2.shape == (B, 2, n_nodes, t_pack), packets2.shape
    assert bool(jnp.all(jnp.isfinite(packets2)))
    sign = np.asarray(packets2[:, 1])
    assert np.all(np.abs(np.abs(sign) - 1.0) < 1e-6)   # sign channel is exactly +/-1
    # log channel is consistent with the raw-channel run: log(|y|^2 + 1e-12)
    np.testing.assert_allclose(
        np.asarray(packets2[:, 0]),
        np.log(np.asarray(packets[:, 0]) ** 2 + np.float32(1e-12)),
        rtol=1e-3, atol=1e-3)

    # --- int8-quantized M variant (v5e/v6e HBM-traffic optimization path) ---
    mod3 = Packets(max_lev=MAX_LEV, m_format="int8")
    packets3, _ = mod3(x)
    packets3 = jax.block_until_ready(packets3)
    assert packets3.shape == (B, 1, n_nodes, t_pack), packets3.shape
    q_err = float(np.max(np.abs(np.asarray(packets3[:, 0], dtype=np.float64) - ref_tree)))
    assert q_err < 0.35, f"int8 quantization error too large: {q_err}"

    print("KERNEL_OK")
</pallas_src>

<mosaic_0001>
module attributes {stable_mosaic.version = 11 : i64} {
  func.func @_packets_kernel(%arg0: i32, %arg1: memref<1x2x256xbf16, #tpu.memory_space<vmem>>, %arg2: memref<1x256x128xbf16, #tpu.memory_space<vmem>>, %arg3: memref<1x128xf32, #tpu.memory_space<vmem>>, %arg4: memref<2x128xf32, #tpu.memory_space<vmem>>) attributes {dimension_semantics = [#tpu.dimension_semantics<parallel>], iteration_bounds = array<i64: 3>, scalar_prefetch = 0 : i64, scratch_operands = 0 : i64, tpu.core_type = #tpu.core_type<tc>, window_params = [{transform_indices = @transform_0, window_bounds = array<i64: 1, 2, 256>}, {transform_indices = @transform_1, window_bounds = array<i64: 1, 256, 128>}, {transform_indices = @transform_2, window_bounds = array<i64: 1, 128>}, {transform_indices = @transform_3, window_bounds = array<i64: 2, 128>}]} {
    %c0 = arith.constant 0 : index
    %c0_0 = arith.constant 0 : index
    %c0_1 = arith.constant 0 : index
    %0 = vector.load %arg1[%c0, %c0_0, %c0_1] : memref<1x2x256xbf16, #tpu.memory_space<vmem>>, vector<1x2x256xbf16>
    %1 = vector.shape_cast %0 : vector<1x2x256xbf16> to vector<2x256xbf16>
    %c0_2 = arith.constant 0 : index
    %c0_3 = arith.constant 0 : index
    %c0_4 = arith.constant 0 : index
    %2 = vector.load %arg2[%c0_2, %c0_3, %c0_4] : memref<1x256x128xbf16, #tpu.memory_space<vmem>>, vector<1x256x128xbf16>
    %3 = vector.shape_cast %2 : vector<1x256x128xbf16> to vector<256x128xbf16>
    %cst = arith.constant dense<0.000000e+00> : vector<2x128xf32>
    %4 = tpu.matmul %1, %3, %cst {dimension_numbers = #tpu.dot_dimension_numbers<[1], [0], [0], [1], [0, 0, 1, 1], [], []>} : vector<2x256xbf16>, vector<256x128xbf16>, vector<2x128xf32> -> vector<2x128xf32>
    %c0_5 = arith.constant 0 : index
    %c0_6 = arith.constant 0 : index
    %5 = vector.load %arg3[%c0_5, %c0_6] : memref<1x128xf32, #tpu.memory_space<vmem>>, vector<1x128xf32>
    %6 = vector.broadcast %5 : vector<1x128xf32> to vector<2x128xf32>
    %7 = arith.mulf %4, %6 : vector<2x128xf32>
    %c0_7 = arith.constant 0 : index
    %c0_8 = arith.constant 0 : index
    %8 = vector.load %arg4[%c0_7, %c0_8] : memref<2x128xf32, #tpu.memory_space<vmem>>, vector<2x128xf32>
    tpu.vector_store %arg4[%c0_7, %c0_8], %7 {strides = array<i32>} : memref<2x128xf32, #tpu.memory_space<vmem>>, vector<2x128xf32>,
    return
  }
  func.func @transform_0(%arg0: i32) -> (i32, i32, i32) {
    %c0_i32 = arith.constant 0 : i32
    %c0_i32_0 = arith.constant 0 : i32
    %c0_i32_1 = arith.constant 0 : i32
    return %arg0, %c0_i32, %c0_i32_0 : i32, i32, i32
  }
  func.func @transform_1(%arg0: i32) -> (i32, i32, i32) {
    %c0_i32 = arith.constant 0 : i32
    %c0_i32_0 = arith.constant 0 : i32
    %c0_i32_1 = arith.constant 0 : i32
    return %arg0, %c0_i32, %c0_i32_0 : i32, i32, i32
  }
  func.func @transform_2(%arg0: i32) -> (i32, i32) {
    %c0_i32 = arith.constant 0 : i32
    %c0_i32_0 = arith.constant 0 : i32
    return %c0_i32, %arg0 : i32, i32
  }
  func.func @transform_3(%arg0: i32) -> (i32, i32) {
    %c0_i32 = arith.constant 0 : i32
    %c0_i32_0 = arith.constant 0 : i32
    return %c0_i32, %arg0 : i32, i32
  }
}

</mosaic_0001>

<bundles_post_ra>
// kernel: _packets_forward.1
= control target key start
LH: loop header
LB: loop body
LE: loop exit
PB: predicated region body
PF: predicated region fallthrough
CT: control target
= control target key end

     0   :  { %s570_s12 = smov 0   ;;  %s620_s0 = inlined_call_operand.vmem [shape: bf16[3,2,256], index: 0, kind: input, shape index: {}]   ;;  %s621_s1 = inlined_call_operand.vmem [shape: bf16[3,256,128], index: 1, kind: input, shape index: {}]   ;;  %s622_s2 = inlined_call_operand.vmem [shape: f32[1,384], index: 2, kind: input, shape index: {}]   ;;  %s623_s3 = inlined_call_operand.vmem [shape: f32[2,384], index: 3, kind: output, shape index: {}]  }
   0x1 LB: > { %s441_s13 = sadd.s32 4294967295, %s548_s12   ;;  %p445_p0 = scmp.ge.s32.totalorder %s548_s12, 1  ;;  %s548_s12 = sphi %s570_s12, %s13_s12  }
   0x2   : > { %p154_p1 = scmp.lt.s32.totalorder %s548_s12, 4 }
   0x4   : > { %p155_p2 = pnand %p445_p0, %p154_p1 }
   0x5   : > { %p184_p3 = scmp.lt.s32.totalorder (!%p155_p2), %s441_s13, 2 }
   0x6   : > { %158 = sbr.rel (%p155_p2) target bundleno = 181 (0xb5), region = 32 }
   0xb   : > { %s625_s13 = smov (!%p184_p3, %s441_s13), 2 }
   0xc   : > { %s516_s14 = sshll.u32 %s625_s13, 7  ;;  %s446_s18 = sshll.u32 %s625_s13, 1 }
   0xd   : > { %s584_s17 = scalar_lea.vmem %s621_s1, %s516_s14  ;;  %s187_s21 = scalar_lea.vmem %s620_s0, %s446_s18 }
   0xe   : > { %v524_v0 = vld [vmem:[%s584_s17 + $0x38] sm:$0xff]  ;;  %v523_v2 = vld [vmem:[%s584_s17 + $0x30] sm:$0xff]  ;;  %v200_v4 = vld [vmem:[%s187_s21] sm:$0x3]  ;;  %s195_s24 = scalar_lea.vmem %s622_s2, %s625_s13  ;;  %s199_s27 = scalar_lea.vmem %s623_s3, %s446_s18 }
   0xf   : > { %v532_v1 = vld [vmem:[%s584_s17 + $0x78] sm:$0xff]  ;;  %335 = vmatpush.bf16.msra.mxu0 %v524_v0  ;;  %v531_v3 = vld [vmem:[%s584_s17 + $0x70] sm:$0xff]  ;;  %v522_v5 = vld [vmem:[%s584_s17 + $0x28] sm:$0xff]  ;;  %234 = vst [vmem:[#allocation1] ss:$9 sm:$0xff] %v200_v4 }
  0x10   : > { %348 = vmatpush.bf16.msra.mxu1 %v532_v1  ;;  %v530_v6 = vld [vmem:[%s584_s17 + $0x68] sm:$0xff]  ;;  %v521_v7 = vld [vmem:[%s584_s17 + $0x20] sm:$0xff]  ;;  %v520_v9 = vld [vmem:[%s584_s17 + $0x18] sm:$0xff] }
  0x11   : > { %v529_v8 = vld [vmem:[%s584_s17 + $0x60] sm:$0xff]  ;;  %v528_v10 = vld [vmem:[%s584_s17 + $0x58] sm:$0xff]  ;;  %v519_v11 = vld [vmem:[%s584_s17 + $0x10] sm:$0xff] }
  0x12   : > { %v527_v12 = vld [vmem:[%s584_s17 + $0x50] sm:$0xff]  ;;  %v518_v13 = vld [vmem:[%s584_s17 + $0x8] sm:$0xff]  ;;  %v517_v15 = vld [vmem:[%s584_s17] sm:$0xff] }
  0x13   : > { %336 = vmatpush.bf16.msra.mxu0 %v523_v2  ;;  %v526_v14 = vld [vmem:[%s584_s17 + $0x48] sm:$0xff]  ;;  %v525_v16 = vld [vmem:[%s584_s17 + $0x40] sm:$0xff] }
  0x14   : > { %349 = vmatpush.bf16.msra.mxu1 %v531_v3  ;;  %v541_v19 = vld [vmem:[%s195_s24] ss:$0 sm:$0xff] }
  0x16   : > { %v235_v17 = vld [vmem:[#allocation1] sm:$0xff]  ;;  %v236_v18 = vld [vmem:[#allocation1 + $0x9] sm:$0xff] }
  0x17   : > { %337 = vmatpush.bf16.msra.mxu0 %v522_v5 }
  0x18   : > { %350 = vmatpush.bf16.msra.mxu1 %v530_v6 }
  0x1b   : > { %338 = vmatpush.bf16.msra.mxu0 %v521_v7 }
  0x1c   : > { %351 = vmatpush.bf16.msra.mxu1 %v529_v8 }
  0x1f   : > { %339 = vmatpush.bf16.msra.mxu0 %v520_v9 }
  0x20   : > { %352 = vmatpush.bf16.msra.mxu1 %v528_v10 }
  0x23   : > { %340 = vmatpush.bf16.msra.mxu0 %v519_v11 }
  0x24   : > { %353 = vmatpush.bf16.msra.mxu1 %v527_v12 }
  0x27   : > { %341 = vmatpush.bf16.msra.mxu0 %v518_v13 }
  0x28   : > { %354 = vmatpush.bf16.msra.mxu1 %v526_v14 }
  0x2b   : > { %342 = vmatpush.bf16.msra.mxu0 %v517_v15 }
  0x2c   : > { %355 = vmatpush.bf16.msra.mxu1 %v525_v16 }
  0x2e   : > { %343 = vmatmul.bf16.vlgmr.msra.gmra.mxu0 %v235_v17 }
  0x2f   : > { %356 = vmatmul.bf16.vlgmr.msra.gmra.mxu1 %v236_v18 }
  0xab   : > { %v344_v20 = vpop.f32.mrf.mxu0 }
  0xac   : > { %v357_v21 = vpop.f32.mrf.mxu1 }
  0xad   : > { %v358_v22 = vadd.f32 %v357_v21, %v344_v20 }
  0xaf   : > { %v365_v23 = vmul.f32 %v541_v19, %v358_v22 }
  0xb1   : > { %366 = vst [vmem:[%s199_s27] sm:$0x3] %v365_v23 }
  0xb3   : > { %v346_v24 = vpop.f32.mrf.mxu0 }
  0xb4   : > { %v359_v25 = vpop.f32.mrf.mxu1 }
  0xb5 PF: > { %s13_s12 = sadd.s32 1, %s548_s12  }
  0xb6   : > { %p10_p4 = scmp.ge.s32.totalorder %s13_s12, 5  }
  0xb8   :  { %12 = sbr.rel (!%p10_p4) target bundleno = 1 (0x1), region = 68 }

</bundles_post_ra>
